<compile_context>
chip_gen: v6e
topology: v6e:2x2x1
jax: 0.10.0
libtpu: 0.0.40
codegen_flags: <defaults>
</compile_context>

<pallas_src>
import math
import functools

import jax
import jax.numpy as jnp
from jax.experimental import pallas as pl
from jax.experimental.pallas import tpu as pltpu


# ---------------------------------------------------------------------------
# tiling helper: largest divisor of `dim` <= pref, preferring HW-aligned ones
# (keeps every BlockSpec evenly tiled so odd shapes still compile/run)
# ---------------------------------------------------------------------------
def _pick_tile(dim, pref, align=8):
    pref = min(pref, dim)
    if dim % pref == 0:
        return pref
    fallback = None
    for t in range(pref, 0, -1):
        if dim % t == 0:
            if t % align == 0:
                return t
            if fallback is None:
                fallback = t
    return fallback if fallback is not None else dim


# ---------------------------------------------------------------------------
# 1) LayerNorm (no affine): x -> (x - mean) * rsqrt(var + eps), stored bf16.
#    The g/b affines are folded into the downstream matmul weights.
# ---------------------------------------------------------------------------
def _ln_kernel(x_ref, o_ref, *, eps):
    x = x_ref[...].astype(jnp.float32)                       # (TR, E)
    mu = jnp.mean(x, axis=-1, keepdims=True)
    xc = x - mu
    var = jnp.mean(xc * xc, axis=-1, keepdims=True)
    o_ref[...] = (xc * jax.lax.rsqrt(var + eps)).astype(o_ref.dtype)


def layernorm(x2d, *, eps=1e-5, out_dtype=None, row_tile=512):
    N, E = x2d.shape
    out_dtype = out_dtype or x2d.dtype
    tr = _pick_tile(N, row_tile, align=16)                   # ~1-2 MiB row tiles
    spec = pl.BlockSpec((tr, E), lambda i: (i, 0))
    return pl.pallas_call(
        functools.partial(_ln_kernel, eps=eps),
        out_shape=jax.ShapeDtypeStruct((N, E), out_dtype),
        grid_spec=pltpu.PrefetchScalarGridSpec(
            num_scalar_prefetch=0,
            grid=(N // tr,),
            in_specs=[spec],
            out_specs=spec),
        compiler_params=pltpu.CompilerParams(dimension_semantics=("parallel",)),
    )(x2d)


# ---------------------------------------------------------------------------
# 2) Tiled matmul + bias (Conv1D: y = x @ W + b), bf16 MXU operands, f32 acc,
#    optional fused GELU / residual-add epilogue.
# ---------------------------------------------------------------------------
def _mm_kernel_factory(activation, has_residual):
    def kernel(x_ref, w_ref, b_ref, *rest):
        if has_residual:
            r_ref, o_ref, acc_ref = rest
        else:
            o_ref, acc_ref = rest
        k = pl.program_id(2)

        @pl.when(k == 0)
        def _():
            acc_ref[...] = jnp.zeros_like(acc_ref)

        acc_ref[...] += jnp.dot(
            x_ref[...].astype(jnp.bfloat16),                 # bf16 -> full MXU rate
            w_ref[...].astype(jnp.bfloat16),
            preferred_element_type=jnp.float32)              # f32 accumulation

        @pl.when(k == pl.num_programs(2) - 1)
        def _():
            out = acc_ref[...] + b_ref[...].astype(jnp.float32)
            if activation == "gelu":
                out = jax.nn.gelu(out, approximate=True)
            if has_residual:
                out = out + r_ref[...].astype(jnp.float32)
            o_ref[...] = out.astype(o_ref.dtype)

    return kernel


def matmul_bias(x, w, b, *, residual=None, activation=None, out_dtype=None,
                tm=512, tn=512, tk=512):
    N, K = x.shape
    Kw, M = w.shape
    assert K == Kw and b.shape == (M,)
    out_dtype = out_dtype or x.dtype
    has_res = residual is not None

    tm = _pick_tile(N, tm, align=16)
    tn = _pick_tile(M, tn, align=128)
    tk = _pick_tile(K, tk, align=128)

    in_specs = [
        pl.BlockSpec((tm, tk), lambda i, j, k: (i, k)),
        pl.BlockSpec((tk, tn), lambda i, j, k: (k, j)),
        pl.BlockSpec((1, tn), lambda i, j, k: (0, j)),
    ]
    inputs = [x, w, b.reshape(1, M).astype(jnp.float32)]
    if has_res:
        in_specs.append(pl.BlockSpec((tm, tn), lambda i, j, k: (i, j)))
        inputs.append(residual)

    bytes_accessed = (x.size * x.dtype.itemsize + w.size * w.dtype.itemsize
                      + 4 * M + N * M * jnp.dtype(out_dtype).itemsize
                      + (residual.size * residual.dtype.itemsize if has_res else 0))
    cost = pl.CostEstimate(
        flops=2 * N * M * K,
        transcendentals=(N * M if activation == "gelu" else 0),
        bytes_accessed=int(bytes_accessed))

    return pl.pallas_call(
        _mm_kernel_factory(activation, has_res),
        out_shape=jax.ShapeDtypeStruct((N, M), out_dtype),
        grid_spec=pltpu.PrefetchScalarGridSpec(
            num_scalar_prefetch=0,
            grid=(N // tm, M // tn, K // tk),
            in_specs=in_specs,
            out_specs=pl.BlockSpec((tm, tn), lambda i, j, k: (i, j)),
            scratch_shapes=[pltpu.VMEM((tm, tn), jnp.float32)],
        ),
        compiler_params=pltpu.CompilerParams(
            dimension_semantics=("parallel", "parallel", "arbitrary")),
        cost_estimate=cost,
    )(*inputs)


# ---------------------------------------------------------------------------
# 3) Causal multi-head flash attention.  q/k/v blocks are (tile, E) slabs with
#    head-contiguous columns; the per-head state lives in VMEM scratch.
#    Matches MultiCNNAttention._attn: scores = q@k^T / sqrt(D) / layer_idx,
#    masked_fill(~tril, -10000), softmax, @ v, heads merged on store.
# ---------------------------------------------------------------------------
def _mha_kernel(q_ref, k_ref, v_ref, o_ref, m_sc, l_sc, acc_sc, *,
                scale, num_heads, head_dim, tq, tk, mask_value):
    H, D = num_heads, head_dim
    qi = pl.program_id(1)
    ki = pl.program_id(2)

    @pl.when(ki == 0)
    def _():
        m_sc[...] = jnp.full_like(m_sc, -jnp.inf)
        l_sc[...] = jnp.zeros_like(l_sc)
        acc_sc[...] = jnp.zeros_like(acc_sc)

    # Skip kv blocks that lie entirely above the causal diagonal (~2x less
    # score / exp work).  TODO(synk): a scalar-prefetch compacted grid would
    # also drop the DMA for those blocks.
    @pl.when(ki * tk <= qi * tq + (tq - 1))
    def _():
        # fold the softmax scale into q once per block instead of scaling every
        # (tq, tk) score tile
        q = (q_ref[...].astype(jnp.float32) * scale).astype(jnp.bfloat16)  # (tq, E)
        kk = k_ref[...].astype(jnp.bfloat16)                               # (tk, E)
        vv = v_ref[...].astype(jnp.bfloat16)                               # (tk, E)
        q_pos = qi * tq + jax.lax.broadcasted_iota(jnp.int32, (tq, tk), 0)
        k_pos = ki * tk + jax.lax.broadcasted_iota(jnp.int32, (tq, tk), 1)
        above = k_pos > q_pos                                # shared across heads

        for h in range(H):                                   # static, unrolled
            cols = slice(h * D, (h + 1) * D)
            s = jax.lax.dot_general(q[:, cols], kk[:, cols],
                                    (((1,), (1,)), ((), ())),
                                    preferred_element_type=jnp.float32)    # (tq, tk)
            s = jnp.where(above, mask_value, s)              # masked_fill(-10000)
            m_prev = m_sc[:, h:h + 1]
            m_new = jnp.maximum(m_prev, s.max(axis=-1, keepdims=True))
            alpha = jnp.exp(m_prev - m_new)
            p = jnp.exp(s - m_new)
            l_sc[:, h:h + 1] = alpha * l_sc[:, h:h + 1] + p.sum(axis=-1, keepdims=True)
            acc_sc[:, cols] = alpha * acc_sc[:, cols] + jnp.dot(
                p.astype(jnp.bfloat16), vv[:, cols],
                preferred_element_type=jnp.float32)
            m_sc[:, h:h + 1] = m_new

    @pl.when(ki == pl.num_programs(2) - 1)
    def _():
        inv_l = pl.reciprocal(l_sc[...], approx=True)        # EUP, not VPU divide
        for h in range(H):
            cols = slice(h * D, (h + 1) * D)
            acc_sc[:, cols] = acc_sc[:, cols] * inv_l[:, h:h + 1]
        o_ref[...] = acc_sc[...].astype(o_ref.dtype)         # one lane-dense store


def flash_attention_causal(q, k, v, *, num_heads, scale, mask_value=-10000.0,
                           q_tile=256, k_tile=256, out_dtype=None):
    B, S, E = q.shape
    H = num_heads
    D = E // H
    out_dtype = out_dtype or q.dtype
    tq = _pick_tile(S, q_tile, align=16)
    tk = _pick_tile(S, k_tile, align=16)
    nq, nk = S // tq, S // tk

    kernel = functools.partial(_mha_kernel, scale=scale, num_heads=H, head_dim=D,
                               tq=tq, tk=tk, mask_value=mask_value)
    in_bytes = (q.size + k.size + v.size) * q.dtype.itemsize
    cost = pl.CostEstimate(
        flops=2 * B * H * S * S * D,                         # qk^T + pv, causal-halved
        transcendentals=B * H * S * S // 2,                  # exp, causal-halved
        bytes_accessed=int(in_bytes + B * S * E * jnp.dtype(out_dtype).itemsize))

    return pl.pallas_call(
        kernel,
        out_shape=jax.ShapeDtypeStruct((B, S, E), out_dtype),
        grid_spec=pltpu.PrefetchScalarGridSpec(
            num_scalar_prefetch=0,
            grid=(B, nq, nk),
            in_specs=[
                pl.BlockSpec((None, tq, E), lambda b, qi, ki: (b, qi, 0)),
                pl.BlockSpec((None, tk, E), lambda b, qi, ki: (b, ki, 0)),
                pl.BlockSpec((None, tk, E), lambda b, qi, ki: (b, ki, 0)),
            ],
            out_specs=pl.BlockSpec((None, tq, E), lambda b, qi, ki: (b, qi, 0)),
            scratch_shapes=[
                pltpu.VMEM((tq, H), jnp.float32),            # running max (1 col/head)
                pltpu.VMEM((tq, H), jnp.float32),            # running denom
                pltpu.VMEM((tq, E), jnp.float32),            # running numerator
            ],
        ),
        compiler_params=pltpu.CompilerParams(
            dimension_semantics=("parallel", "parallel", "arbitrary")),
        cost_estimate=cost,
    )(q, k, v)


# ---------------------------------------------------------------------------
# Full block:  mlp(ln2(x)) + attn(ln1(x))
# ---------------------------------------------------------------------------
def cc_pgt_block(x, p, *, num_heads, layer_idx, scale_attn_by_layer_idx=True,
                 eps=1e-5):
    B, S, E = x.shape
    H = num_heads
    assert E % H == 0
    D = E // H
    N = B * S
    f32, bf16 = jnp.float32, jnp.bfloat16

    # One-time (weight-sized) parameter prep:
    #   * fold LN affines into the first matmul of each branch
    #     (ln(x) @ W + b  ==  xn @ (diag(g) W) + (b_ln @ W + b))
    #   * pre-slice c_attn into per-q/k/v weights so the projections write
    #     head-contiguous (N,E) slabs directly (no split/transpose passes)
    #   * pre-cast weights to bf16 for the MXU (biases stay f32)
    # In a real model these would be precomputed once, not per forward call.
    w_attn = p["ln1_g"][:, None] * p["c_attn_w"]
    b_attn = p["ln1_b"] @ p["c_attn_w"] + p["c_attn_b"]
    wq, wk, wv = (w_attn[:, i * E:(i + 1) * E].astype(bf16) for i in range(3))
    bq, bk, bv = (b_attn[i * E:(i + 1) * E] for i in range(3))
    w_fc = (p["ln2_g"][:, None] * p["mlp_fc_w"]).astype(bf16)
    b_fc = p["ln2_b"] @ p["mlp_fc_w"] + p["mlp_fc_b"]
    w_cp = p["c_proj_w"].astype(bf16)
    w_mp = p["mlp_proj_w"].astype(bf16)

    x2 = x.reshape(N, E)                                     # lane-dense 2-D slab
    xn = layernorm(x2, eps=eps, out_dtype=bf16)              # shared normalized slab

    # ---- attention branch (MultiCNNAttention) ----
    scale = 1.0 / math.sqrt(D)
    if scale_attn_by_layer_idx:
        scale = scale / layer_idx
    q = matmul_bias(xn, wq, bq, out_dtype=bf16)              # (N, E)
    k = matmul_bias(xn, wk, bk, out_dtype=bf16)
    v = matmul_bias(xn, wv, bv, out_dtype=bf16)
    attn = flash_attention_causal(q.reshape(B, S, E), k.reshape(B, S, E),
                                  v.reshape(B, S, E), num_heads=H, scale=scale,
                                  out_dtype=bf16)            # (B, S, E), heads merged
    attn_out = matmul_bias(attn.reshape(N, E), w_cp, p["c_proj_b"],
                           out_dtype=f32)                    # (N, E)
    # TODO(synk): attention_mask / head_mask inputs (None path only) and
    # attn/residual dropout (eval-mode identity) are not implemented.

    # ---- MLP branch (PGTMLP); branch sum fused into its output projection ----
    # TODO(synk): config.activation dispatch not translated; GELU(tanh) assumed.
    h1 = matmul_bias(xn, w_fc, b_fc, activation="gelu", out_dtype=bf16)
    out = matmul_bias(h1, w_mp, p["mlp_proj_b"], residual=attn_out, out_dtype=f32)
    return out.reshape(B, S, E)


# ---------------------------------------------------------------------------
# Pure-JAX reference (mirrors the PyTorch forward exactly, eval mode, f32)
# ---------------------------------------------------------------------------
def reference_block(x, p, *, num_heads, layer_idx, eps=1e-5):
    B, S, E = x.shape
    H = num_heads
    D = E // H
    hi = jax.lax.Precision.HIGHEST

    def ln(t, g, b):
        mu = jnp.mean(t, axis=-1, keepdims=True)
        var = jnp.mean((t - mu) ** 2, axis=-1, keepdims=True)
        return (t - mu) / jnp.sqrt(var + eps) * g + b

    h1 = ln(x, p["ln1_g"], p["ln1_b"])
    h2 = ln(x, p["ln2_g"], p["ln2_b"])

    qkv = jnp.einsum("bse,ef->bsf", h1, p["c_attn_w"], precision=hi) + p["c_attn_b"]
    q, k, v = jnp.split(qkv, 3, axis=-1)
    sh = lambda t: t.reshape(B, S, H, D).transpose(0, 2, 1, 3)
    q, k, v = sh(q), sh(k), sh(v)
    w = jnp.einsum("bhqd,bhkd->bhqk", q, k, precision=hi)
    w = w / math.sqrt(D) / layer_idx
    causal = jnp.tril(jnp.ones((S, S), dtype=bool))
    w = jnp.where(causal[None, None], w, -10000.0)
    w = jax.nn.softmax(w, axis=-1)
    a = jnp.einsum("bhqk,bhkd->bhqd", w, v, precision=hi)
    a = a.transpose(0, 2, 1, 3).reshape(B, S, E)
    attn_out = jnp.einsum("bse,ef->bsf", a, p["c_proj_w"], precision=hi) + p["c_proj_b"]

    m = jnp.einsum("bse,ef->bsf", h2, p["mlp_fc_w"], precision=hi) + p["mlp_fc_b"]
    m = jax.nn.gelu(m, approximate=True)
    m = jnp.einsum("bsf,fe->bse", m, p["mlp_proj_w"], precision=hi) + p["mlp_proj_b"]
    return m + attn_out


if __name__ == "__main__":
    # Small config: batch=2, chunk(seq)=8, num_embedding=32, heads=4,
    # intermediate_size=4, layer_idx=2 (scale_attn_by_layer_idx=True).
    B, S, E, H, I = 2, 8, 32, 4, 4
    layer_idx = 2

    keys = jax.random.split(jax.random.PRNGKey(0), 13)
    x = jax.random.normal(keys[0], (B, S, E), jnp.float32)
    p = {
        "ln1_g": 1.0 + 0.1 * jax.random.normal(keys[1], (E,), jnp.float32),
        "ln1_b": 0.1 * jax.random.normal(keys[2], (E,), jnp.float32),
        "ln2_g": 1.0 + 0.1 * jax.random.normal(keys[3], (E,), jnp.float32),
        "ln2_b": 0.1 * jax.random.normal(keys[4], (E,), jnp.float32),
        "c_attn_w": 0.2 * jax.random.normal(keys[5], (E, 3 * E), jnp.float32),
        "c_attn_b": 0.02 * jax.random.normal(keys[6], (3 * E,), jnp.float32),
        "c_proj_w": 0.2 * jax.random.normal(keys[7], (E, E), jnp.float32),
        "c_proj_b": 0.02 * jax.random.normal(keys[8], (E,), jnp.float32),
        "mlp_fc_w": 0.2 * jax.random.normal(keys[9], (E, E * I), jnp.float32),
        "mlp_fc_b": 0.02 * jax.random.normal(keys[10], (E * I,), jnp.float32),
        "mlp_proj_w": 0.2 * jax.random.normal(keys[11], (E * I, E), jnp.float32),
        "mlp_proj_b": 0.02 * jax.random.normal(keys[12], (E,), jnp.float32),
    }

    out = cc_pgt_block(x, p, num_heads=H, layer_idx=layer_idx)
    out = jax.block_until_ready(out)

    ref = reference_block(x, p, num_heads=H, layer_idx=layer_idx)
    assert out.shape == (B, S, E)
    max_err = float(jnp.max(jnp.abs(out - ref)))
    # bf16 MXU operands + approx reciprocal => slightly looser tolerance than f32
    assert jnp.allclose(out, ref, atol=5e-2, rtol=5e-2), f"max_err={max_err}"

    print("KERNEL_OK")
</pallas_src>

<mosaic_0001>
module attributes {stable_mosaic.version = 11 : i64} {
  func.func @_ln_kernel(%arg0: i32, %arg1: memref<16x32xf32, #tpu.memory_space<vmem>>, %arg2: memref<16x32xbf16, #tpu.memory_space<vmem>>) attributes {dimension_semantics = [#tpu.dimension_semantics<parallel>], iteration_bounds = array<i64: 1>, scalar_prefetch = 0 : i64, scratch_operands = 0 : i64, tpu.core_type = #tpu.core_type<tc>, window_params = [{transform_indices = @transform_0, window_bounds = array<i64: 16, 32>}, {transform_indices = @transform_1, window_bounds = array<i64: 16, 32>}]} {
    %c0 = arith.constant 0 : index
    %c0_0 = arith.constant 0 : index
    %0 = vector.load %arg1[%c0, %c0_0] : memref<16x32xf32, #tpu.memory_space<vmem>>, vector<16x32xf32>
    %cst = arith.constant dense<0.000000e+00> : vector<16xf32>
    %1 = vector.multi_reduction <add>, %0, %cst [1] : vector<16x32xf32> to vector<16xf32>
    %2 = vector.shape_cast %1 : vector<16xf32> to vector<16x1xf32>
    %cst_1 = arith.constant 3.200000e+01 : f32
    %3 = vector.broadcast %cst_1 : f32 to vector<16x1xf32>
    %4 = arith.divf %2, %3 : vector<16x1xf32>
    %5 = vector.broadcast %4 : vector<16x1xf32> to vector<16x32xf32>
    %6 = arith.subf %0, %5 : vector<16x32xf32>
    %7 = arith.mulf %6, %6 : vector<16x32xf32>
    %cst_2 = arith.constant dense<0.000000e+00> : vector<16xf32>
    %8 = vector.multi_reduction <add>, %7, %cst_2 [1] : vector<16x32xf32> to vector<16xf32>
    %9 = vector.shape_cast %8 : vector<16xf32> to vector<16x1xf32>
    %cst_3 = arith.constant 3.200000e+01 : f32
    %10 = vector.broadcast %cst_3 : f32 to vector<16x1xf32>
    %11 = arith.divf %9, %10 : vector<16x1xf32>
    %cst_4 = arith.constant 9.99999974E-6 : f32
    %12 = vector.broadcast %cst_4 : f32 to vector<16x1xf32>
    %13 = arith.addf %11, %12 : vector<16x1xf32>
    %14 = math.rsqrt %13 : vector<16x1xf32>
    %15 = vector.broadcast %14 : vector<16x1xf32> to vector<16x32xf32>
    %16 = arith.mulf %6, %15 : vector<16x32xf32>
    %17 = arith.truncf %16 : vector<16x32xf32> to vector<16x32xbf16>
    %c0_5 = arith.constant 0 : index
    %c0_6 = arith.constant 0 : index
    %18 = vector.load %arg2[%c0_5, %c0_6] : memref<16x32xbf16, #tpu.memory_space<vmem>>, vector<16x32xbf16>
    tpu.vector_store %arg2[%c0_5, %c0_6], %17 {strides = array<i32>} : memref<16x32xbf16, #tpu.memory_space<vmem>>, vector<16x32xbf16>,
    return
  }
  func.func @transform_0(%arg0: i32) -> (i32, i32) {
    %c0_i32 = arith.constant 0 : i32
    %c0_i32_0 = arith.constant 0 : i32
    return %arg0, %c0_i32 : i32, i32
  }
  func.func @transform_1(%arg0: i32) -> (i32, i32) {
    %c0_i32 = arith.constant 0 : i32
    %c0_i32_0 = arith.constant 0 : i32
    return %arg0, %c0_i32 : i32, i32
  }
}

</mosaic_0001>

<bundles_post_ra>
// kernel: tpu_custom_call.1
= control target key start
LH: loop header
LB: loop body
LE: loop exit
PB: predicated region body
PF: predicated region fallthrough
CT: control target
= control target key end

     0   :  { %6 = vsyncpa [#allocation3], 0  ;;  %s165_s0 = inlined_call_operand.hbm [shape: f32[16,32], index: 0, kind: input, shape index: {}]   ;;  %s166_s1 = inlined_call_operand.hbm [shape: bf16[16,32], index: 1, kind: output, shape index: {}]  }
   0x1   :  { %7 = vsyncpa [#allocation4], 0  ;;  %s139_s6 = smov [#allocation2]  }
   0x2   :  { %s13_s7 = sshll.u32 %s139_s6, 4  ;;  %s14_s7 = int_to_ptr.vmem [resolvable:$true] %s13_s7 }
   0x3   :  { %s103_s8 = scalar_lea.vmem %s14_s7, 256  ;;  %p108_p1 = scmp.lt.s32.totalorder %s14_s7, %s14_s7 }
   0x4   :  { %p104_p0 = scmp.ne.s32.totalorder %s14_s7, %s103_s8  ;;  %p109_p2 = scmp.lt.s32.totalorder %s103_s8, %s103_s8 }
   0x6   :  { %p110_p3 = por %p109_p2, %p108_p1 }
   0x8   :  { %p111_p4 = pnand %p110_p3, %p104_p0 }
   0xa   :  { %114 = shalt.err (!%p111_p4)
}
   0xb   :  { %s140_s9 = smov 128   ;;  %s141_s10 = smov 8  }
   0xc   :  { %19 = dma.hbm_to_vmem [thread:$0]  %s165_s0, 256, %s14_s7, [#allocation3], %s140_s9, %s140_s9, %s141_s10  }
   0xd   :  { %135 = dma.done.wait [#allocation3], 256  }
   0xe   :  { %136 = vsyncadd [#allocation3], 4294967040  ;;  %vm25_vm0 = vcmask 261120   ;;  %v23_v0 = vld [vmem:[#allocation2] sm:$0xff]  ;;  %v24_v1 = vld [vmem:[#allocation2 + $0x8] sm:$0xff]  ;;  %vm61_vm1 = vcmask 257024  }
   0xf   :  { %v26_v2 = vsel %vm25_vm0, %v23_v0, 0.0  ;;  %v29_v3 = vsel %vm25_vm0, %v24_v1, 0.0  ;;  %s142_s0 = smov [#allocation5]  }
  0x10   :  { %27 = vadd.xlane.f32.xlu0 %v26_v2  ;;  %s69_s13 = sshll.u32 %s142_s0, 4  ;;  %s70_s13 = int_to_ptr.vmem [resolvable:$true] %s69_s13 }
  0x11   :  { %s115_s14 = scalar_lea.vmem %s70_s13, 128  ;;  %p120_p6 = scmp.lt.s32.totalorder %s70_s13, %s70_s13 }
  0x12   :  { %p116_p5 = scmp.ne.s32.totalorder %s70_s13, %s115_s14  ;;  %p121_p7 = scmp.lt.s32.totalorder %s115_s14, %s115_s14 }
  0x14   :  { %30 = vadd.xlane.f32.xlu0 %v29_v3  ;;  %p122_p8 = por %p121_p7, %p120_p6 }
  0x16   :  { %p123_p9 = pnand %p122_p8, %p116_p5 }
  0x99   :  { %v28_v4 = vpop.xlane.xlu0 %27 }
  0x9a   :  { %v33_v5 = vmul.f32 0.03125, %v28_v4 }
  0x9c   :  { %v35_v6 = vsub.f32 %v23_v0, %v33_v5 }
  0x9d   :  { %v31_v7 = vpop.xlane.xlu0 %30 }
  0x9e   :  { %v34_v8 = vmul.f32 0.03125, %v31_v7  ;;  %v37_v9 = vmul.f32 %v35_v6, %v35_v6 }
  0xa0   :  { %v36_v10 = vsub.f32 %v24_v1, %v34_v8  ;;  %v39_v11 = vsel %vm25_vm0, %v37_v9, 0.0 }
  0xa1   :  { %40 = vadd.xlane.f32.xlu1 %v39_v11 }
  0xa2   :  { %v38_v12 = vmul.f32 %v36_v10, %v36_v10 }
  0xa4   :  { %v42_v13 = vsel %vm25_vm0, %v38_v12, 0.0 }
  0xa5   :  { %43 = vadd.xlane.f32.xlu1 %v42_v13 }
 0x12a   :  { %v41_v14 = vpop.xlane.xlu1 %40 }
 0x12b   :  { %v45_v15 = vmul.f32 0.03125, %v41_v14 }
 0x12d   :  { %v47_v16 = vadd.f32 1e-05, %v45_v15 }
 0x12e   :  { %v44_v17 = vpop.xlane.xlu1 %43 }
 0x12f   :  { %91 = vrsqrt.f32 %v47_v16  ;;  %v46_v18 = vmul.f32 0.03125, %v44_v17 }
 0x131   :  { %v48_v19 = vadd.f32 1e-05, %v46_v18 }
 0x133   :  { %93 = vrsqrt.f32 %v48_v19 }
 0x13c   :  { %v92_v20 = vpop.eup %91 }
 0x13d   :  { %v51_v21 = vmul.f32 %v92_v20, %v35_v6 }
 0x13f   :  { %v83_v22 = vpack.c.bf16 %v51_v21, %v51_v21 }
 0x140   :  { %v94_v23 = vpop.eup %93 }
 0x141   :  { %v52_v24 = vmul.f32 %v94_v23, %v36_v10  ;;  %62 = vst.msk [vmem:[#allocation5] sm:$0xf] %vm61_vm1, %v83_v22 }
 0x143   :  { %v84_v25 = vpack.c.bf16 %v52_v24, %v52_v24 }
 0x145   :  { %63 = vst.msk [vmem:[#allocation5 + $0x4] sm:$0xf] %vm61_vm1, %v84_v25 }
 0x146   :  { %126 = shalt.err (!%p123_p9)
}
 0x147   :  { %s143_s15 = smov 64   ;;  %s144_s16 = smov 4  }
 0x148   :  { %75 = dma.vmem_to_hbm [thread:$0]  %s70_s13, 128, %s166_s1, [#allocation4], %s143_s15, %s143_s15, %s144_s16  }
 0x149   :  { %137 = dma.done.wait [#allocation4], 128  }
 0x14a   :  { %138 = vsyncadd [#allocation4], 4294967168 }
 0x14b   :  { %79 = vsyncpa [#allocation3], 1 }
 0x14c   :  { %80 = vsyncpa [#allocation4], 1 }

</bundles_post_ra>
